<compile_context>
chip_gen: v6e
topology: v6e:2x2x1
jax: 0.10.0
libtpu: 0.0.40
codegen_flags: <defaults>
</compile_context>

<pallas_src>
import jax
import jax.numpy as jnp
from jax.experimental import pallas as pl
from jax.experimental.pallas import tpu as pltpu


def _plan_chunks(n_rows, row_bytes, max_chunks=4):
    """Statically split [0, n_rows) into up to `max_chunks` contiguous chunks.

    Small copies use a single DMA; large copies (>= 8 MiB) are split so
    several DMA engines can run in parallel.  Chunk starts are 8-row aligned.
    """
    total_bytes = n_rows * row_bytes
    if total_bytes < (8 << 20) or n_rows < 8 * max_chunks:
        return ((0, n_rows),)
    base = -(-n_rows // max_chunks)          # ceil(n_rows / max_chunks)
    base = ((base + 7) // 8) * 8             # 8-row aligned chunk boundaries
    chunks = []
    start = 0
    while start < n_rows:
        rows = min(base, n_rows - start)
        chunks.append((start, rows))
        start += rows
    return tuple(chunks)


def _make_hbm_copy_kernel(chunks):
    """Kernel: copy src -> dst entirely with direct HBM->HBM DMAs."""

    def kernel(src_hbm, dst_hbm, sems):
        copies = []
        for c, (start, rows) in enumerate(chunks):
            cp = pltpu.make_async_copy(
                src_hbm.at[pl.ds(start, rows), :],
                dst_hbm.at[pl.ds(start, rows), :],
                sems.at[c],
            )
            cp.start()
            copies.append(cp)
        for cp in copies:                     # start all, then wait all -> overlap
            cp.wait()

    return kernel


def semantic_attention_forward(z):
    """z: (N, 2, D) -> (N, 2*D), == torch.cat([z[:, 0], z[:, 1]], dim=1).

    Zero-cost path for callers that don't need a kernel:
    jnp.reshape(z, (N, 2*D))  (or donate z and alias input to output).
    The Pallas kernel below performs the same identity move as direct
    HBM->HBM DMA(s) — no VMEM round trip.
    """
    N, M, D = z.shape
    assert M == 2, "SemanticAttention.forward hard-codes 2 semantic channels"
    out_dim = 2 * D

    # Row-major identity view of the concat (free for contiguous z; if z has a
    # non-default layout XLA materializes the relayout outside the kernel).
    z2d = z.reshape(N, out_dim)

    row_bytes = out_dim * jnp.dtype(z2d.dtype).itemsize
    chunks = _plan_chunks(N, row_bytes)

    return pl.pallas_call(
        _make_hbm_copy_kernel(chunks),
        out_shape=jax.ShapeDtypeStruct((N, out_dim), z.dtype),
        in_specs=[pl.BlockSpec(memory_space=pl.ANY)],   # stay in HBM
        out_specs=pl.BlockSpec(memory_space=pl.ANY),    # stay in HBM
        scratch_shapes=[pltpu.SemaphoreType.DMA((len(chunks),))],
    )(z2d)


def init_params(key, in_size, hidden_size=128):
    # Parameters of self.project (Linear(in,hidden)+Tanh, Linear(hidden,1,bias=False)).
    # TODO(synk): self.project is defined in __init__ but never used by forward(),
    # so it is not lowered to any kernel; params kept only for module parity.
    k1, k2 = jax.random.split(key)
    w1 = jax.random.normal(k1, (hidden_size, in_size), jnp.float32) * 0.02
    b1 = jnp.zeros((hidden_size,), jnp.float32)
    w2 = jax.random.normal(k2, (1, hidden_size), jnp.float32) * 0.02
    return {"w1": w1, "b1": b1, "w2": w2}


if __name__ == "__main__":
    key = jax.random.PRNGKey(0)
    N, M, D = 8, 2, 32            # batch=8, 2 semantic channels, in_size=32
    kz, kp = jax.random.split(key)
    z = jax.random.normal(kz, (N, M, D), jnp.float32)
    _params = init_params(kp, in_size=D, hidden_size=32)  # unused by forward

    out = semantic_attention_forward(z)
    out = jax.block_until_ready(out)

    # Reference: plain-JAX transcription of the torch forward.
    beta = jnp.array([[1.0], [0.0]], jnp.float32)
    alpha = jnp.array([[0.0], [1.0]], jnp.float32)
    z1 = jnp.sum(beta[None] * z, axis=1)
    z2 = jnp.sum(alpha[None] * z, axis=1)
    ref = jnp.concatenate([z1, z2], axis=1)

    assert out.shape == (N, 2 * D)
    assert jnp.allclose(out, ref, atol=1e-6), "mismatch vs reference"
    print("KERNEL_OK")
</pallas_src>

<mosaic_0001>
module attributes {stable_mosaic.version = 11 : i64} {
  func.func @kernel(%arg0: memref<8x64xf32, #tpu.memory_space<any>>, %arg1: memref<8x64xf32, #tpu.memory_space<any>>, %arg2: memref<1x!tpu.dma_semaphore, #tpu.memory_space<semaphore_mem>>) attributes {dimension_semantics = [], scalar_prefetch = 0 : i64, scratch_operands = 1 : i64, tpu.core_type = #tpu.core_type<tc>} {
    %c0_i32 = arith.constant 0 : i32
    %c0_i32_0 = arith.constant 0 : i32
    %c0_i32_1 = arith.constant 0 : i32
    %0 = tpu.memref_slice %arg0[%c0_i32_0, %c0_i32_1] : memref<8x64xf32, #tpu.memory_space<any>> -> memref<8x64xf32, #tpu.memory_space<any>>
    %c0_i32_2 = arith.constant 0 : i32
    %c0_i32_3 = arith.constant 0 : i32
    %1 = tpu.memref_slice %arg1[%c0_i32_2, %c0_i32_3] : memref<8x64xf32, #tpu.memory_space<any>> -> memref<8x64xf32, #tpu.memory_space<any>>
    %2 = tpu.memref_slice %arg2[%c0_i32] : memref<1x!tpu.dma_semaphore, #tpu.memory_space<semaphore_mem>> -> memref<1x!tpu.dma_semaphore, #tpu.memory_space<semaphore_mem>>
    %3 = tpu.memref_squeeze %2 : memref<1x!tpu.dma_semaphore, #tpu.memory_space<semaphore_mem>> -> memref<!tpu.dma_semaphore, #tpu.memory_space<semaphore_mem>>
    tpu.enqueue_dma source(%0 : memref<8x64xf32, #tpu.memory_space<any>>) target(%1 : memref<8x64xf32, #tpu.memory_space<any>>) target_semaphore(%3 : memref<!tpu.dma_semaphore, #tpu.memory_space<semaphore_mem>>)
    %c0_i32_4 = arith.constant 0 : i32
    %c0_i32_5 = arith.constant 0 : i32
    %c0_i32_6 = arith.constant 0 : i32
    %4 = tpu.memref_slice %arg0[%c0_i32_5, %c0_i32_6] : memref<8x64xf32, #tpu.memory_space<any>> -> memref<8x64xf32, #tpu.memory_space<any>>
    %c0_i32_7 = arith.constant 0 : i32
    %c0_i32_8 = arith.constant 0 : i32
    %5 = tpu.memref_slice %arg1[%c0_i32_7, %c0_i32_8] : memref<8x64xf32, #tpu.memory_space<any>> -> memref<8x64xf32, #tpu.memory_space<any>>
    %6 = tpu.memref_slice %arg2[%c0_i32_4] : memref<1x!tpu.dma_semaphore, #tpu.memory_space<semaphore_mem>> -> memref<1x!tpu.dma_semaphore, #tpu.memory_space<semaphore_mem>>
    %7 = tpu.memref_squeeze %6 : memref<1x!tpu.dma_semaphore, #tpu.memory_space<semaphore_mem>> -> memref<!tpu.dma_semaphore, #tpu.memory_space<semaphore_mem>>
    tpu.wait_dma2 semaphore(%7 : memref<!tpu.dma_semaphore, #tpu.memory_space<semaphore_mem>>) src(%4 : memref<8x64xf32, #tpu.memory_space<any>>) dst(%5 : memref<8x64xf32, #tpu.memory_space<any>>)
    return
  }
}

</mosaic_0001>

<bundles_post_ra>
// kernel: tpu_custom_call.1
= control target key start
LH: loop header
LB: loop body
LE: loop exit
PB: predicated region body
PF: predicated region fallthrough
CT: control target
= control target key end

     0   :  { %s28_s6 = smov [#allocation2]   ;;  %s29_s7 = smov 131072   ;;  %s47_s0 = inlined_call_operand.hbm [shape: f32[8,64], index: 0, kind: input, shape index: {}]   ;;  %s48_s1 = inlined_call_operand.hbm [shape: f32[8,64], index: 1, kind: output, shape index: {}]  }
   0x1   :  { %s30_s8 = smov 0  }
   0x2   :  { %12 = dma.general %s47_s0, 128, %s48_s1, %s28_s6, %s29_s7, [#allocation4], %s30_s8, 0  }
   0x3   :  { %26 = dma.done.wait [#allocation2], 128 }
   0x4   :  { %27 = vsyncadd [#allocation2], 4294967168 }
   0x5   :  { %16 = vsyncmov [#allocation2] }
   0x8   :  { %s17_s13 = vpop.sfrf %16 }
   0x9   :  { %p22_p0 = scmp.ne.s32.totalorder %s17_s13, 0 }
   0xb   :  { %21 = shalt.err (%p22_p0)  }

</bundles_post_ra>
